<compile_context>
chip_gen: v5e
topology: v5e:2x2
jax: 0.10.0
libtpu: 0.0.40
codegen_flags: <defaults>
</compile_context>

<pallas_src>
import functools

import jax
import jax.numpy as jnp
from jax.experimental import pallas as pl
from jax.experimental.pallas import tpu as pltpu

D_IN, D_H, D_OUT = 784, 200, 10
PAD_IN, PAD_H, PAD_OUT = 896, 256, 128   # lane-dense (multiples of 128)
DROPOUT_P = 0.5


def _round_up(n, m):
    return ((n + m - 1) // m) * m


def _pad2(a, rows, cols, dtype):
    r, c = a.shape
    return jnp.pad(a, ((0, rows - r), (0, cols - c))).astype(dtype)


def mnist_2nn_kernel(x_ref, w1_ref, b1_ref, w2_ref, b2_ref, w3_ref, b3_ref,
                     bits1_ref, bits2_ref, o_ref, *,
                     keep_threshold, inv_keep, use_dropout):
    """One batch tile: (TB, 896) -> (TB, 128) with all three layers fused."""
    x = x_ref[...]                                                     # (TB, 896) bf16

    # fc1 + relu (+ dropout)
    h = jnp.dot(x, w1_ref[...], preferred_element_type=jnp.float32)   # (TB, 256) f32
    h = jnp.maximum(h + b1_ref[...], 0.0)
    if use_dropout:
        keep = bits1_ref[...] < jnp.uint32(keep_threshold)
        h = jnp.where(keep, h * inv_keep, 0.0)
    h = h.astype(jnp.bfloat16)

    # fc2 + relu (+ dropout)
    h = jnp.dot(h, w2_ref[...], preferred_element_type=jnp.float32)   # (TB, 256) f32
    h = jnp.maximum(h + b2_ref[...], 0.0)
    if use_dropout:
        keep = bits2_ref[...] < jnp.uint32(keep_threshold)
        h = jnp.where(keep, h * inv_keep, 0.0)
    h = h.astype(jnp.bfloat16)

    # fc3
    out = jnp.dot(h, w3_ref[...], preferred_element_type=jnp.float32)  # (TB, 128) f32
    o_ref[...] = out + b3_ref[...]


def mnist_2nn_forward(x, params, key, *, dropout_prob=DROPOUT_P, training=True,
                      tile_b=128):
    """Forward pass. params = (w1, b1, w2, b2, w3, b3) with weights stored (in, out)."""
    w1, b1, w2, b2, w3, b3 = params
    B = x.shape[0]

    TB = min(tile_b, _round_up(B, 8))       # batch tile (multiple of 8 sublanes)
    B_pad = _round_up(B, TB)
    nb = B_pad // TB

    # Zero-pad to lane-dense shapes; bf16 matmul inputs, f32 biases.
    xp = _pad2(x, B_pad, PAD_IN, jnp.bfloat16)
    w1p = _pad2(w1, PAD_IN, PAD_H, jnp.bfloat16)
    b1p = _pad2(b1, 1, PAD_H, jnp.float32)
    w2p = _pad2(w2, PAD_H, PAD_H, jnp.bfloat16)
    b2p = _pad2(b2, 1, PAD_H, jnp.float32)
    w3p = _pad2(w3, PAD_H, PAD_OUT, jnp.bfloat16)
    b3p = _pad2(b3, 1, PAD_OUT, jnp.float32)

    use_dropout = bool(training) and dropout_prob > 0.0
    keep_prob = 1.0 - dropout_prob
    if use_dropout:
        k1, k2 = jax.random.split(key)
        bits1 = jax.random.bits(k1, (B_pad, PAD_H), dtype=jnp.uint32)
        bits2 = jax.random.bits(k2, (B_pad, PAD_H), dtype=jnp.uint32)
        keep_threshold = min(int(keep_prob * (2 ** 32)), 2 ** 32 - 1)
        inv_keep = 1.0 / keep_prob
    else:
        bits1 = jnp.zeros((B_pad, PAD_H), jnp.uint32)
        bits2 = jnp.zeros((B_pad, PAD_H), jnp.uint32)
        keep_threshold = 0
        inv_keep = 1.0

    kernel = functools.partial(
        mnist_2nn_kernel,
        keep_threshold=keep_threshold,
        inv_keep=inv_keep,
        use_dropout=use_dropout,
    )

    batch_map = lambda i: (i, 0)
    const_map = lambda i: (0, 0)

    out_padded = pl.pallas_call(
        kernel,
        out_shape=jax.ShapeDtypeStruct((B_pad, PAD_OUT), jnp.float32),
        grid=(nb,),
        in_specs=[
            pl.BlockSpec((TB, PAD_IN), batch_map),        # x
            pl.BlockSpec((PAD_IN, PAD_H), const_map),     # w1 (VMEM-resident)
            pl.BlockSpec((1, PAD_H), const_map),          # b1
            pl.BlockSpec((PAD_H, PAD_H), const_map),      # w2
            pl.BlockSpec((1, PAD_H), const_map),          # b2
            pl.BlockSpec((PAD_H, PAD_OUT), const_map),    # w3
            pl.BlockSpec((1, PAD_OUT), const_map),        # b3
            pl.BlockSpec((TB, PAD_H), batch_map),         # dropout bits layer 1
            pl.BlockSpec((TB, PAD_H), batch_map),         # dropout bits layer 2
        ],
        out_specs=pl.BlockSpec((TB, PAD_OUT), batch_map),
        compiler_params=pltpu.CompilerParams(
            dimension_semantics=("parallel",),
            vmem_limit_bytes=32 * 1024 * 1024,
        ),
    )(xp, w1p, b1p, w2p, b2p, w3p, b3p, bits1, bits2)

    return out_padded[:B, :D_OUT]


def init_params(key):
    """Deterministic init matching nn.Linear shapes (weights stored (in, out))."""
    k1, k2, k3, k4, k5, k6 = jax.random.split(key, 6)

    def lin_init(kw, kb, fan_in, fan_out):
        bound = 1.0 / jnp.sqrt(fan_in)
        w = jax.random.uniform(kw, (fan_in, fan_out), jnp.float32, -bound, bound)
        b = jax.random.uniform(kb, (1, fan_out), jnp.float32, -bound, bound)
        return w, b

    w1, b1 = lin_init(k1, k2, D_IN, D_H)
    w2, b2 = lin_init(k3, k4, D_H, D_H)
    w3, b3 = lin_init(k5, k6, D_H, D_OUT)
    return (w1, b1, w2, b2, w3, b3)


def reference_eval(x, params):
    """Pure-JAX reference (eval mode, no dropout), bf16 matmul inputs like the kernel."""
    w1, b1, w2, b2, w3, b3 = params
    h = x.astype(jnp.bfloat16)
    h = jnp.maximum(jnp.dot(h, w1.astype(jnp.bfloat16),
                            preferred_element_type=jnp.float32) + b1, 0.0)
    h = h.astype(jnp.bfloat16)
    h = jnp.maximum(jnp.dot(h, w2.astype(jnp.bfloat16),
                            preferred_element_type=jnp.float32) + b2, 0.0)
    h = h.astype(jnp.bfloat16)
    return jnp.dot(h, w3.astype(jnp.bfloat16),
                   preferred_element_type=jnp.float32) + b3


if __name__ == "__main__":
    key = jax.random.PRNGKey(0)
    pkey, xkey, dkey = jax.random.split(key, 3)

    params = init_params(pkey)
    batch = 8
    x = jax.random.normal(xkey, (batch, D_IN), dtype=jnp.float32)

    # Training-mode forward (dropout active).
    out_train = mnist_2nn_forward(x, params, dkey, dropout_prob=DROPOUT_P, training=True)
    out_train = jax.block_until_ready(out_train)
    assert out_train.shape == (batch, D_OUT), out_train.shape
    assert out_train.dtype == jnp.float32, out_train.dtype
    assert bool(jnp.all(jnp.isfinite(out_train)))

    # Eval-mode forward (dropout skipped) checked against a pure-JAX reference.
    out_eval = mnist_2nn_forward(x, params, dkey, dropout_prob=DROPOUT_P, training=False)
    out_eval = jax.block_until_ready(out_eval)
    ref = jax.block_until_ready(reference_eval(x, params))
    assert jnp.allclose(out_eval, ref, atol=2e-2, rtol=2e-2), (
        float(jnp.max(jnp.abs(out_eval - ref))))

    print("KERNEL_OK")
</pallas_src>

<mosaic_0001>
module attributes {stable_mosaic.version = 11 : i64} {
  func.func @mnist_2nn_kernel(%arg0: i32, %arg1: memref<8x896xbf16, #tpu.memory_space<vmem>>, %arg2: memref<896x256xbf16, #tpu.memory_space<vmem>>, %arg3: memref<1x256xf32, #tpu.memory_space<vmem>>, %arg4: memref<256x256xbf16, #tpu.memory_space<vmem>>, %arg5: memref<1x256xf32, #tpu.memory_space<vmem>>, %arg6: memref<256x128xbf16, #tpu.memory_space<vmem>>, %arg7: memref<1x128xf32, #tpu.memory_space<vmem>>, %arg8: memref<8x256xi32, #tpu.memory_space<vmem>>, %arg9: memref<8x256xi32, #tpu.memory_space<vmem>>, %arg10: memref<8x128xf32, #tpu.memory_space<vmem>>) attributes {dimension_semantics = [#tpu.dimension_semantics<parallel>], iteration_bounds = array<i64: 1>, scalar_prefetch = 0 : i64, scratch_operands = 0 : i64, tpu.core_type = #tpu.core_type<tc>, window_params = [{transform_indices = @transform_0, window_bounds = array<i64: 8, 896>}, {pipeline_mode = #tpu.pipeline_mode<synchronous>, transform_indices = @transform_1, window_bounds = array<i64: 896, 256>}, {pipeline_mode = #tpu.pipeline_mode<synchronous>, transform_indices = @transform_2, window_bounds = array<i64: 1, 256>}, {pipeline_mode = #tpu.pipeline_mode<synchronous>, transform_indices = @transform_3, window_bounds = array<i64: 256, 256>}, {pipeline_mode = #tpu.pipeline_mode<synchronous>, transform_indices = @transform_4, window_bounds = array<i64: 1, 256>}, {pipeline_mode = #tpu.pipeline_mode<synchronous>, transform_indices = @transform_5, window_bounds = array<i64: 256, 128>}, {pipeline_mode = #tpu.pipeline_mode<synchronous>, transform_indices = @transform_6, window_bounds = array<i64: 1, 128>}, {transform_indices = @transform_7, window_bounds = array<i64: 8, 256>}, {transform_indices = @transform_8, window_bounds = array<i64: 8, 256>}, {transform_indices = @transform_9, window_bounds = array<i64: 8, 128>}]} {
    %c0 = arith.constant 0 : index
    %c0_0 = arith.constant 0 : index
    %0 = vector.load %arg1[%c0, %c0_0] : memref<8x896xbf16, #tpu.memory_space<vmem>>, vector<8x896xbf16>
    %c0_1 = arith.constant 0 : index
    %c0_2 = arith.constant 0 : index
    %1 = vector.load %arg2[%c0_1, %c0_2] : memref<896x256xbf16, #tpu.memory_space<vmem>>, vector<896x256xbf16>
    %cst = arith.constant dense<0.000000e+00> : vector<8x256xf32>
    %2 = tpu.matmul %0, %1, %cst {dimension_numbers = #tpu.dot_dimension_numbers<[1], [0], [0], [1], [0, 0, 1, 1], [], []>} : vector<8x896xbf16>, vector<896x256xbf16>, vector<8x256xf32> -> vector<8x256xf32>
    %c0_3 = arith.constant 0 : index
    %c0_4 = arith.constant 0 : index
    %3 = vector.load %arg3[%c0_3, %c0_4] : memref<1x256xf32, #tpu.memory_space<vmem>>, vector<1x256xf32>
    %4 = vector.broadcast %3 : vector<1x256xf32> to vector<8x256xf32>
    %5 = arith.addf %2, %4 : vector<8x256xf32>
    %cst_5 = arith.constant 0.000000e+00 : f32
    %6 = vector.broadcast %cst_5 : f32 to vector<8x256xf32>
    %7 = arith.maximumf %5, %6 : vector<8x256xf32>
    %c0_6 = arith.constant 0 : index
    %c0_7 = arith.constant 0 : index
    %8 = vector.load %arg8[%c0_6, %c0_7] : memref<8x256xi32, #tpu.memory_space<vmem>>, vector<8x256xi32>
    %c-2147483648_i32 = arith.constant -2147483648 : i32
    %9 = vector.broadcast %c-2147483648_i32 : i32 to vector<8x256xi32>
    %10 = arith.cmpi ult, %8, %9 : vector<8x256xi32>
    %cst_8 = arith.constant 2.000000e+00 : f32
    %11 = vector.broadcast %cst_8 : f32 to vector<8x256xf32>
    %12 = arith.mulf %7, %11 : vector<8x256xf32>
    %cst_9 = arith.constant 0.000000e+00 : f32
    %13 = vector.broadcast %cst_9 : f32 to vector<8x256xf32>
    %14 = arith.select %10, %12, %13 : vector<8x256xi1>, vector<8x256xf32>
    %15 = arith.truncf %14 : vector<8x256xf32> to vector<8x256xbf16>
    %c0_10 = arith.constant 0 : index
    %c0_11 = arith.constant 0 : index
    %16 = vector.load %arg4[%c0_10, %c0_11] : memref<256x256xbf16, #tpu.memory_space<vmem>>, vector<256x256xbf16>
    %cst_12 = arith.constant dense<0.000000e+00> : vector<8x256xf32>
    %17 = tpu.matmul %15, %16, %cst_12 {dimension_numbers = #tpu.dot_dimension_numbers<[1], [0], [0], [1], [0, 0, 1, 1], [], []>} : vector<8x256xbf16>, vector<256x256xbf16>, vector<8x256xf32> -> vector<8x256xf32>
    %c0_13 = arith.constant 0 : index
    %c0_14 = arith.constant 0 : index
    %18 = vector.load %arg5[%c0_13, %c0_14] : memref<1x256xf32, #tpu.memory_space<vmem>>, vector<1x256xf32>
    %19 = vector.broadcast %18 : vector<1x256xf32> to vector<8x256xf32>
    %20 = arith.addf %17, %19 : vector<8x256xf32>
    %cst_15 = arith.constant 0.000000e+00 : f32
    %21 = vector.broadcast %cst_15 : f32 to vector<8x256xf32>
    %22 = arith.maximumf %20, %21 : vector<8x256xf32>
    %c0_16 = arith.constant 0 : index
    %c0_17 = arith.constant 0 : index
    %23 = vector.load %arg9[%c0_16, %c0_17] : memref<8x256xi32, #tpu.memory_space<vmem>>, vector<8x256xi32>
    %c-2147483648_i32_18 = arith.constant -2147483648 : i32
    %24 = vector.broadcast %c-2147483648_i32_18 : i32 to vector<8x256xi32>
    %25 = arith.cmpi ult, %23, %24 : vector<8x256xi32>
    %cst_19 = arith.constant 2.000000e+00 : f32
    %26 = vector.broadcast %cst_19 : f32 to vector<8x256xf32>
    %27 = arith.mulf %22, %26 : vector<8x256xf32>
    %cst_20 = arith.constant 0.000000e+00 : f32
    %28 = vector.broadcast %cst_20 : f32 to vector<8x256xf32>
    %29 = arith.select %25, %27, %28 : vector<8x256xi1>, vector<8x256xf32>
    %30 = arith.truncf %29 : vector<8x256xf32> to vector<8x256xbf16>
    %c0_21 = arith.constant 0 : index
    %c0_22 = arith.constant 0 : index
    %31 = vector.load %arg6[%c0_21, %c0_22] : memref<256x128xbf16, #tpu.memory_space<vmem>>, vector<256x128xbf16>
    %cst_23 = arith.constant dense<0.000000e+00> : vector<8x128xf32>
    %32 = tpu.matmul %30, %31, %cst_23 {dimension_numbers = #tpu.dot_dimension_numbers<[1], [0], [0], [1], [0, 0, 1, 1], [], []>} : vector<8x256xbf16>, vector<256x128xbf16>, vector<8x128xf32> -> vector<8x128xf32>
    %c0_24 = arith.constant 0 : index
    %c0_25 = arith.constant 0 : index
    %33 = vector.load %arg7[%c0_24, %c0_25] : memref<1x128xf32, #tpu.memory_space<vmem>>, vector<1x128xf32>
    %34 = vector.broadcast %33 : vector<1x128xf32> to vector<8x128xf32>
    %35 = arith.addf %32, %34 : vector<8x128xf32>
    %c0_26 = arith.constant 0 : index
    %c0_27 = arith.constant 0 : index
    %36 = vector.load %arg10[%c0_26, %c0_27] : memref<8x128xf32, #tpu.memory_space<vmem>>, vector<8x128xf32>
    tpu.vector_store %arg10[%c0_26, %c0_27], %35 {strides = array<i32>} : memref<8x128xf32, #tpu.memory_space<vmem>>, vector<8x128xf32>,
    return
  }
  func.func @transform_0(%arg0: i32) -> (i32, i32) {
    %c0_i32 = arith.constant 0 : i32
    %c0_i32_0 = arith.constant 0 : i32
    return %arg0, %c0_i32 : i32, i32
  }
  func.func @transform_1(%arg0: i32) -> (i32, i32) {
    %c0_i32 = arith.constant 0 : i32
    %c0_i32_0 = arith.constant 0 : i32
    %c0_i32_1 = arith.constant 0 : i32
    return %c0_i32, %c0_i32_0 : i32, i32
  }
  func.func @transform_2(%arg0: i32) -> (i32, i32) {
    %c0_i32 = arith.constant 0 : i32
    %c0_i32_0 = arith.constant 0 : i32
    %c0_i32_1 = arith.constant 0 : i32
    return %c0_i32, %c0_i32_0 : i32, i32
  }
  func.func @transform_3(%arg0: i32) -> (i32, i32) {
    %c0_i32 = arith.constant 0 : i32
    %c0_i32_0 = arith.constant 0 : i32
    %c0_i32_1 = arith.constant 0 : i32
    return %c0_i32, %c0_i32_0 : i32, i32
  }
  func.func @transform_4(%arg0: i32) -> (i32, i32) {
    %c0_i32 = arith.constant 0 : i32
    %c0_i32_0 = arith.constant 0 : i32
    %c0_i32_1 = arith.constant 0 : i32
    return %c0_i32, %c0_i32_0 : i32, i32
  }
  func.func @transform_5(%arg0: i32) -> (i32, i32) {
    %c0_i32 = arith.constant 0 : i32
    %c0_i32_0 = arith.constant 0 : i32
    %c0_i32_1 = arith.constant 0 : i32
    return %c0_i32, %c0_i32_0 : i32, i32
  }
  func.func @transform_6(%arg0: i32) -> (i32, i32) {
    %c0_i32 = arith.constant 0 : i32
    %c0_i32_0 = arith.constant 0 : i32
    %c0_i32_1 = arith.constant 0 : i32
    return %c0_i32, %c0_i32_0 : i32, i32
  }
  func.func @transform_7(%arg0: i32) -> (i32, i32) {
    %c0_i32 = arith.constant 0 : i32
    %c0_i32_0 = arith.constant 0 : i32
    return %arg0, %c0_i32 : i32, i32
  }
  func.func @transform_8(%arg0: i32) -> (i32, i32) {
    %c0_i32 = arith.constant 0 : i32
    %c0_i32_0 = arith.constant 0 : i32
    return %arg0, %c0_i32 : i32, i32
  }
  func.func @transform_9(%arg0: i32) -> (i32, i32) {
    %c0_i32 = arith.constant 0 : i32
    %c0_i32_0 = arith.constant 0 : i32
    return %arg0, %c0_i32 : i32, i32
  }
}

</mosaic_0001>

<bundles_post_ra>
// kernel: tpu_custom_call.1
= control target key start
LH: loop header
LB: loop body
LE: loop exit
PB: predicated region body
PF: predicated region fallthrough
CT: control target
= control target key end

     0   :  { %14 = vsyncpa [#allocation3], 0  ;;  %s2662_s0 = inlined_call_operand.hbm [shape: bf16[8,896], index: 0, kind: input, shape index: {}]   ;;  %s2663_s1 = inlined_call_operand.hbm [shape: bf16[896,256], index: 1, kind: input, shape index: {}]   ;;  %s2664_s2 = inlined_call_operand.hbm [shape: f32[1,256], index: 2, kind: input, shape index: {}]   ;;  %s2665_s3 = inlined_call_operand.hbm [shape: bf16[256,256], index: 3, kind: input, shape index: {}]   ;;  %s2666_s4 = inlined_call_operand.vmem [shape: f32[1,256], index: 4, kind: input, shape index: {}]   ;;  %s2667_s5 = inlined_call_operand.hbm [shape: bf16[256,128], index: 5, kind: input, shape index: {}]   ;;  %s2668_s6 = inlined_call_operand.vmem [shape: f32[1,128], index: 6, kind: input, shape index: {}]   ;;  %s2669_s7 = inlined_call_operand.hbm [shape: u32[8,256], index: 7, kind: input, shape index: {}]   ;;  %s2670_s8 = inlined_call_operand.hbm [shape: u32[8,256], index: 8, kind: input, shape index: {}]   ;;  %s2671_s9 = inlined_call_operand.hbm [shape: f32[8,128], index: 9, kind: output, shape index: {}]  }
   0x1   :  { %15 = vsyncpa [#allocation6], 0 }
   0x2   :  { %16 = vsyncpa [#allocation9], 0 }
   0x3   :  { %17 = vsyncpa [#allocation12], 0  ;;  %s34_s11 = sshll.u32 %s2663_s1, 4  ;;  %s35_s11 = int_to_ptr.hbm [resolvable:$true] %s34_s11 }
   0x4   :  { %18 = vsyncpa [#allocation4], 0  ;;  %s2521_s12 = smov [#allocation5]   ;;  %s58_s16 = sshll.u32 %s2665_s3, 4  ;;  %s59_s16 = int_to_ptr.hbm [resolvable:$true] %s58_s16 }
   0x5   :  { %s36_s13 = sshll.u32 %s2521_s12, 4  ;;  %s2522_s17 = smov 128   ;;  %s37_s13 = int_to_ptr.vmem [resolvable:$true] %s36_s13 }
   0x6   :  { %s2523_s18 = smov 8   ;;  %s2524_s19 = smov [#allocation8]  }
   0x7   :  { %42 = dma.hbm_to_vmem [thread:$0]  %s35_s11, 14336, %s37_s13, [#allocation6], %s2522_s17, %s2522_s17, %s2523_s18  }
   0x8   :  { %s60_s20 = sshll.u32 %s2524_s19, 4  ;;  %s89_s23 = sshll.u32 %s2669_s7, 4  ;;  %s61_s20 = int_to_ptr.vmem [resolvable:$true] %s60_s20  ;;  %s90_s23 = int_to_ptr.hbm [resolvable:$true] %s89_s23 }
   0x9   :  { %66 = dma.hbm_to_vmem [thread:$0]  %s59_s16, 4096, %s61_s20, [#allocation9], %s2522_s17, %s2522_s17, %s2523_s18  }
   0xa   :  { %s24_s25 = sshll.u32 %s2662_s0, 4  ;;  %s2525_s26 = smov [#allocation11]   ;;  %s25_s25 = int_to_ptr.hbm [resolvable:$true] %s24_s25 }
   0xb   :  { %s91_s27 = sshll.u32 %s2525_s26, 4  ;;  %s2526_s3 = smov [#allocation2]   ;;  %s92_s27 = int_to_ptr.vmem [resolvable:$true] %s91_s27 }
   0xc   :  { %94 = dma.hbm_to_vmem [thread:$0]  %s90_s23, 256, %s92_s27, [#allocation12]  }
   0xd   :  { %s26_s28 = sshll.u32 %s2526_s3, 4  ;;  %s48_s10 = sshll.u32 %s2664_s2, 4  ;;  %s27_s28 = int_to_ptr.vmem [resolvable:$true] %s26_s28  ;;  %s49_s10 = int_to_ptr.hbm [resolvable:$true] %s48_s10 }
   0xe   :  { %29 = dma.hbm_to_vmem [thread:$0]  %s25_s25, 448, %s27_s28, [#allocation3]  }
   0xf   :  { %s73_s12 = sshll.u32 %s2667_s5, 4  ;;  %s2527_s13 = smov [#allocation7]   ;;  %s74_s12 = int_to_ptr.hbm [resolvable:$true] %s73_s12 }
  0x10   :  { %s50_s0 = sshll.u32 %s2527_s13, 4  ;;  %s2528_s14 = smov [#allocation10]   ;;  %s51_s0 = int_to_ptr.vmem [resolvable:$true] %s50_s0 }
  0x11   :  { %53 = dma.hbm_to_vmem [thread:$0]  %s49_s10, 32, %s51_s0, [#allocation6]  }
  0x12   :  { %s75_s15 = sshll.u32 %s2528_s14, 4  ;;  %s2529_s16 = smov 64   ;;  %s76_s15 = int_to_ptr.vmem [resolvable:$true] %s75_s15 }
  0x13   :  { %s2530_s17 = smov 4   ;;  %s100_s19 = sshll.u32 %s2670_s8, 4  ;;  %s101_s19 = int_to_ptr.hbm [resolvable:$true] %s100_s19 }
  0x14   :  { %81 = dma.hbm_to_vmem [thread:$0]  %s74_s12, 2048, %s76_s15, [#allocation9], %s2529_s16, %s2529_s16, %s2530_s17  }
  0x15   :  { %s2531_s20 = smov [#allocation13]  }
  0x16   :  { %s102_s21 = sshll.u32 %s2531_s20, 4  ;;  %s103_s21 = int_to_ptr.vmem [resolvable:$true] %s102_s21 }
  0x17   :  { %105 = dma.hbm_to_vmem [thread:$0]  %s101_s19, 256, %s103_s21, [#allocation12]  }
  0x18   :  { %2511 = dma.done.wait [#allocation3], 448  }
  0x19   :  { %2512 = vsyncadd [#allocation3], 4294966848 }
  0x1a   :  { %2513 = dma.done.wait [#allocation6], 14368  }
  0x1b   :  { %2514 = vsyncadd [#allocation6], 4294952928 }
  0x1c   :  { %2515 = dma.done.wait [#allocation9], 6144  }
  0x1d   :  { %2516 = vsyncadd [#allocation9], 4294961152 }
  0x1e   :  { %2517 = dma.done.wait [#allocation12], 512  }
  0x1f   :  { %2518 = vsyncadd [#allocation12], 4294966784  ;;  %v1542_v0 = vld [vmem:[#allocation5 + $0x70] sm:$0xf]  ;;  %v2161_v1 = vld [vmem:[#allocation5 + $0x74] sm:$0xf0] }
  0x20   :  { %v1606_v2 = vld [vmem:[#allocation5 + $0xf0] sm:$0xf]  ;;  %v1543_v3 = vor.u32 %v2161_v1, %v1542_v0  ;;  %v2177_v4 = vld [vmem:[#allocation5 + $0xf4] sm:$0xf0]  ;;  %v1534_v9 = vld [vmem:[#allocation5 + $0x60] sm:$0xf] }
  0x21   :  { %v1670_v5 = vld [vmem:[#allocation5 + $0x170] sm:$0xf]  ;;  %v2193_v6 = vld [vmem:[#allocation5 + $0x174] sm:$0xf0]  ;;  %v1607_v7 = vor.u32 %v2177_v4, %v1606_v2  ;;  %v2159_v10 = vld [vmem:[#allocation5 + $0x64] sm:$0xf0] }
  0x22   :  { %v1671_v8 = vor.u32 %v2193_v6, %v1670_v5  ;;  %v1598_v11 = vld [vmem:[#allocation5 + $0xe0] sm:$0xf]  ;;  %841 = vmatpush.bf16.msra.mxu0 %v1543_v3  ;;  %v1535_v12 = vor.u32 %v2159_v10, %v1534_v9  ;;  %v2175_v13 = vld [vmem:[#allocation5 + $0xe4] sm:$0xf0]  ;;  %v1526_v18 = vld [vmem:[#allocation5 + $0x50] sm:$0xf] }
  0x23   :  { %v1662_v14 = vld [vmem:[#allocation5 + $0x160] sm:$0xf]  ;;  %v2191_v15 = vld [vmem:[#allocation5 + $0x164] sm:$0xf0]  ;;  %854 = vmatpush.bf16.msra.mxu1 %v1607_v7  ;;  %v1599_v16 = vor.u32 %v2175_v13, %v1598_v11  ;;  %v2157_v19 = vld [vmem:[#allocation5 + $0x54] sm:$0xf0] }
  0x24   :  { %867 = vmatpush.bf16.msra.mxu2 %v1671_v8  ;;  %v1663_v17 = vor.u32 %v2191_v15, %v1662_v14  ;;  %v1590_v20 = vld [vmem:[#allocation5 + $0xd0] sm:$0xf]  ;;  %v2173_v21 = vld [vmem:[#allocation5 + $0xd4] sm:$0xf0]  ;;  %v1527_v24 = vor.u32 %v2157_v19, %v1526_v18  ;;  %v1518_v25 = vld [vmem:[#allocation5 + $0x40] sm:$0xf] }
  0x25   :  { %v1654_v22 = vld [vmem:[#allocation5 + $0x150] sm:$0xf]  ;;  %v2189_v23 = vld [vmem:[#allocation5 + $0x154] sm:$0xf0]  ;;  %v2155_v26 = vld [vmem:[#allocation5 + $0x44] sm:$0xf0]  ;;  %v1591_v27 = vor.u32 %v2173_v21, %v1590_v20 }
  0x26   :  { %842 = vmatpush.bf16.msra.mxu0 %v1535_v12  ;;  %v1655_v28 = vor.u32 %v2189_v23, %v1654_v22  ;;  %v1582_v29 = vld [vmem:[#allocation5 + $0xc0] sm:$0xf]  ;;  %v1734_v30 = vld [vmem:[#allocation5 + $0x1f0] sm:$0xf]  ;;  %v2209_v31 = vld [vmem:[#allocation5 + $0x1f4] sm:$0xf0]  ;;  %v1519_v37 = vor.u32 %v2155_v26, %v1518_v25 }
  0x27   :  { %855 = vmatpush.bf16.msra.mxu1 %v1599_v16  ;;  %v2171_v32 = vld [vmem:[#allocation5 + $0xc4] sm:$0xf0]  ;;  %v1646_v33 = vld [vmem:[#allocation5 + $0x140] sm:$0xf]  ;;  %v1735_v35 = vor.u32 %v2209_v31, %v1734_v30  ;;  %v1510_v38 = vld [vmem:[#allocation5 + $0x30] sm:$0xf] }
  0x28   :  { %868 = vmatpush.bf16.msra.mxu2 %v1663_v17  ;;  %v2187_v34 = vld [vmem:[#allocation5 + $0x144] sm:$0xf0]  ;;  %v1726_v36 = vld [vmem:[#allocation5 + $0x1e0] sm:$0xf]  ;;  %v2153_v39 = vld [vmem:[#allocation5 + $0x34] sm:$0xf0]  ;;  %v1583_v41 = vor.u32 %v2171_v32, %v1582_v29 }
  0x29   :  { %880 = vmatpush.bf16.msra.mxu3 %v1735_v35  ;;  %v2207_v40 = vld [vmem:[#allocation5 + $0x1e4] sm:$0xf0]  ;;  %v1647_v42 = vor.u32 %v2187_v34, %v1646_v33  ;;  %v1574_v43 = vld [vmem:[#allocation5 + $0xb0] sm:$0xf]  ;;  %v2169_v44 = vld [vmem:[#allocation5 + $0xb4] sm:$0xf0]  ;;  %v1511_v50 = vor.u32 %v2153_v39, %v1510_v38 }
  0x2a   :  { %843 = vmatpush.bf16.msra.mxu0 %v1527_v24  ;;  %v1638_v45 = vld [vmem:[#allocation5 + $0x130] sm:$0xf]  ;;  %v1727_v46 = vor.u32 %v2207_v40, %v1726_v36  ;;  %v2185_v47 = vld [vmem:[#allocation5 + $0x134] sm:$0xf0]  ;;  %v1502_v51 = vld [vmem:[#allocation5 + $0x20] sm:$0xf]  ;;  %v1575_v54 = vor.u32 %v2169_v44, %v1574_v43 }
  0x2b   :  { %856 = vmatpush.bf16.msra.mxu1 %v1591_v27  ;;  %v1718_v48 = vld [vmem:[#allocation5 + $0x1d0] sm:$0xf]  ;;  %v2205_v49 = vld [vmem:[#allocation5 + $0x1d4] sm:$0xf0]  ;;  %v2151_v52 = vld [vmem:[#allocation5 + $0x24] sm:$0xf0]  ;;  %v1639_v55 = vor.u32 %v2185_v47, %v1638_v45 }
  0x2c   :  { %869 = vmatpush.bf16.msra.mxu2 %v1655_v28  ;;  %v1719_v53 = vor.u32 %v2205_v49, %v1718_v48  ;;  %v1566_v56 = vld [vmem:[#allocation5 + $0xa0] sm:$0xf]  ;;  %v2203_v58 = vld [vmem:[#allocation5 + $0x1c4] sm:$0xf0]  ;;  %v1503_v62 = vor.u32 %v2151_v52, %v1502_v51  ;;  %v1494_v63 = vld [vmem:[#allocation5 + $0x10] sm:$0xf] }
  0x2d   :  { %881 = vmatpush.bf16.msra.mxu3 %v1727_v46  ;;  %v1710_v57 = vld [vmem:[#allocation5 + $0x1c0] sm:$0xf]  ;;  %v2167_v59 = vld [vmem:[#allocation5 + $0xa4] sm:$0xf0]  ;;  %v2149_v0 = vld [vmem:[#allocation5 + $0x14] sm:$0xf0] }
  0x2e   :  { %844 = vmatpush.bf16.msra.mxu0 %v1519_v37  ;;  %v1630_v60 = vld [vmem:[#allocation5 + $0x120] sm:$0xf]  ;;  %v2183_v61 = vld [vmem:[#allocation5 + $0x124] sm:$0xf0]  ;;  %v1711_v1 = vor.u32 %v2203_v58, %v1710_v57  ;;  %v1567_v2 = vor.u32 %v2167_v59, %v1566_v56  ;;  %v1558_v4 = vld [vmem:[#allocation5 + $0x90] sm:$0xf]  ;;  %v1495_v10 = vor.u32 %v2149_v0, %v1494_v63 }
  0x2f   :  { %857 = vmatpush.bf16.msra.mxu1 %v1583_v41  ;;  %v1631_v3 = vor.u32 %v2183_v61, %v1630_v60  ;;  %v1702_v5 = vld [vmem:[#allocation5 + $0x1b0] sm:$0xf]  ;;  %v2201_v6 = vld [vmem:[#allocation5 + $0x1b4] sm:$0xf0]  ;;  %v1486_v11 = vld [vmem:[#allocation5] sm:$0xf] }
  0x30   :  { %870 = vmatpush.bf16.msra.mxu2 %v1647_v42  ;;  %v2165_v7 = vld [vmem:[#allocation5 + $0x94] sm:$0xf0]  ;;  %v1622_v8 = vld [vmem:[#allocation5 + $0x110] sm:$0xf]  ;;  %v2147_v12 = vld [vmem:[#allocation5 + $0x4] sm:$0xf0]  ;;  %v1703_v14 = vor.u32 %v2201_v6, %v1702_v5 }
  0x31   :  { %882 = vmatpush.bf16.msra.mxu3 %v1719_v53  ;;  %v2181_v9 = vld [vmem:[#allocation5 + $0x114] sm:$0xf0]  ;;  %v1550_v13 = vld [vmem:[#allocation5 + $0x80] sm:$0xf]  ;;  %v1559_v15 = vor.u32 %v2165_v7, %v1558_v4  ;;  %v2163_v17 = vld [vmem:[#allocation5 + $0x84] sm:$0xf0]  ;;  %v1487_v26 = vor.u32 %v2147_v12, %v1486_v11 }
  0x32   :  { %845 = vmatpush.bf16.msra.mxu0 %v1511_v50  ;;  %v1623_v16 = vor.u32 %v2181_v9, %v1622_v8  ;;  %v1694_v18 = vld [vmem:[#allocation5 + $0x1a0] sm:$0xf]  ;;  %v2199_v19 = vld [vmem:[#allocation5 + $0x1a4] sm:$0xf0]  ;;  %v1798_v22 = vld [vmem:[#allocation5 + $0x270] sm:$0xf]  ;;  %v1551_v30 = vor.u32 %v2163_v17, %v1550_v13 }
  0x33   :  { %858 = vmatpush.bf16.msra.mxu1 %v1575_v54  ;;  %v1614_v20 = vld [vmem:[#allocation5 + $0x100] sm:$0xf]  ;;  %v2179_v21 = vld [vmem:[#allocation5 + $0x104] sm:$0xf0]  ;;  %v2225_v23 = vld [vmem:[#allocation5 + $0x274] sm:$0xf0]  ;;  %v1695_v29 = vor.u32 %v2199_v19, %v1694_v18 }
  0x34   :  { %871 = vmatpush.bf16.msra.mxu2 %v1639_v55  ;;  %v1862_v24 = vld [vmem:[#allocation5 + $0x2f0] sm:$0xf]  ;;  %v2241_v25 = vld [vmem:[#allocation5 + $0x2f4] sm:$0xf0]  ;;  %v1615_v31 = vor.u32 %v2179_v21, %v1614_v20  ;;  %v1799_v34 = vor.u32 %v2225_v23, %v1798_v22  ;;  %v1790_v36 = vld [vmem:[#allocation5 + $0x260] sm:$0xf] }
  0x35   :  { %883 = vmatpush.bf16.msra.mxu3 %v1711_v1  ;;  %v1926_v27 = vld [vmem:[#allocation5 + $0x370] sm:$0xf]  ;;  %v2257_v28 = vld [vmem:[#allocation5 + $0x374] sm:$0xf0]  ;;  %v1863_v35 = vor.u32 %v2241_v25, %v1862_v24  ;;  %v2223_v37 = vld [vmem:[#allocation5 + $0x264] sm:$0xf0] }
  0x36   :  { %846 = vmatpush.bf16.msra.mxu0 %v1503_v62  ;;  %v1686_v32 = vld [vmem:[#allocation5 + $0x190] sm:$0xf]  ;;  %v2197_v33 = vld [vmem:[#allocation5 + $0x194] sm:$0xf0]  ;;  %v1927_v38 = vor.u32 %v2257_v28, %v1926_v27  ;;  %v1854_v39 = vld [vmem:[#allocation5 + $0x2e0] sm:$0xf]  ;;  %v1791_v46 = vor.u32 %v2223_v37, %v1790_v36 }
  0x37   :  { %859 = vmatpush.bf16.msra.mxu1 %v1567_v2  ;;  %v2239_v40 = vld [vmem:[#allocation5 + $0x2e4] sm:$0xf0]  ;;  %v135_v41 = vld [vmem:[#allocation2 + $0x8] sm:$0xff]  ;;  %v1918_v42 = vld [vmem:[#allocation5 + $0x360] sm:$0xf]  ;;  %v1687_v44 = vor.u32 %v2197_v33, %v1686_v32  ;;  %s2532_s23 = smov [#allocation14]  }
  0x38   :  { %872 = vmatpush.bf16.msra.mxu2 %v1631_v3  ;;  %v2255_v43 = vld [vmem:[#allocation5 + $0x364] sm:$0xf0]  ;;  %v262_v45 = vunpack.c.l.b16 %v135_v41  ;;  %v1678_v47 = vld [vmem:[#allocation5 + $0x180] sm:$0xf]  ;;  %v1855_v50 = vor.u32 %v2239_v40, %v1854_v39  ;;  %v1782_v51 = vld [vmem:[#allocation5 + $0x250] sm:$0xf]  ;;  %v263_v61 = vunpack.c.h.b16 %v135_v41 }
  0x39   :  { %884 = vmatpush.bf16.msra.mxu3 %v1703_v14  ;;  %v2195_v48 = vld [vmem:[#allocation5 + $0x184] sm:$0xf0]  ;;  %v2160_v52 = vld [vmem:[#allocation5 + $0x74] sm:$0xf]  ;;  %v1544_v53 = vld [vmem:[#allocation5 + $0x78] sm:$0xf0]  ;;  %v1919_v57 = vor.u32 %v2255_v43, %v1918_v42 }
  0x3a   :  { %847 = vmatpush.bf16.msra.mxu0 %v1495_v10  ;;  %v134_v49 = vld [vmem:[#allocation2] sm:$0xff]  ;;  %v2604_v54 = vpack.c.b16 %v262_v45, %v262_v45  ;;  %v2221_v58 = vld [vmem:[#allocation5 + $0x254] sm:$0xf0]  ;;  %v1846_v59 = vld [vmem:[#allocation5 + $0x2d0] sm:$0xf]  ;;  %v1679_v0 = vor.u32 %v2195_v48, %v1678_v47  ;;  %v1547_v3 = vor.u32 %v2160_v52, %v1544_v53  ;;  %v2612_v13 = vpack.c.b16 %v263_v61, %v263_v61  ;;  %s1469_s1 = sshll.u32 %s2532_s23, 4  ;;  %s1470_s1 = int_to_ptr.vmem [resolvable:$true] %s1469_s1 }
  0x3b   :  { %860 = vmatpush.bf16.msra.mxu1 %v1559_v15  ;;  %v260_v55 = vunpack.c.l.b16 %v134_v49  ;;  %v261_v56 = vunpack.c.h.b16 %v134_v49  ;;  %v2237_v60 = vld [vmem:[#allocation5 + $0x2d4] sm:$0xf0]  ;;  %v1910_v62 = vld [vmem:[#allocation5 + $0x350] sm:$0xf]  ;;  %v1783_v4 = vor.u32 %v2221_v58, %v1782_v51  ;;  %v1774_v6 = vld [vmem:[#allocation5 + $0x240] sm:$0xf] }
  0x3c   :  { %873 = vmatpush.bf16.msra.mxu2 %v1623_v16  ;;  %v2253_v63 = vld [vmem:[#allocation5 + $0x354] sm:$0xf0]  ;;  %v1847_v5 = vor.u32 %v2237_v60, %v1846_v59  ;;  %v2158_v7 = vld [vmem:[#allocation5 + $0x64] sm:$0xf]  ;;  %v1536_v8 = vld [vmem:[#allocation5 + $0x68] sm:$0xf0] }
  0x3d   :  { %885 = vmatpush.bf16.msra.mxu3 %v1695_v29  ;;  %v2607_v1 = vpack.c.b16 %v260_v55, %v260_v55  ;;  %v2609_v2 = vpack.c.b16 %v261_v56, %v261_v56  ;;  %v1911_v9 = vor.u32 %v2253_v63, %v1910_v62  ;;  %v2219_v10 = vld [vmem:[#allocation5 + $0x244] sm:$0xf0]  ;;  %v1838_v11 = vld [vmem:[#allocation5 + $0x2c0] sm:$0xf]  ;;  %v1539_v16 = vor.u32 %v2158_v7, %v1536_v8  ;;  %v1766_v19 = vld [vmem:[#allocation5 + $0x230] sm:$0xf] }
  0x3e   :  { %848 = vmatpush.bf16.msra.mxu0 %v1487_v26  ;;  %v2235_v12 = vld [vmem:[#allocation5 + $0x2c4] sm:$0xf0]  ;;  %v1902_v14 = vld [vmem:[#allocation5 + $0x340] sm:$0xf]  ;;  %v1775_v17 = vor.u32 %v2219_v10, %v1774_v6  ;;  %v2156_v20 = vld [vmem:[#allocation5 + $0x54] sm:$0xf] }
  0x3f   :  { %861 = vmatpush.bf16.msra.mxu1 %v1551_v30  ;;  %v2251_v15 = vld [vmem:[#allocation5 + $0x344] sm:$0xf0]  ;;  %v1839_v18 = vor.u32 %v2235_v12, %v1838_v11  ;;  %v1528_v21 = vld [vmem:[#allocation5 + $0x58] sm:$0xf0]  ;;  %v2217_v23 = vld [vmem:[#allocation5 + $0x234] sm:$0xf0] }
  0x40   :  { %874 = vmatpush.bf16.msra.mxu2 %v1615_v31  ;;  %v1903_v22 = vor.u32 %v2251_v15, %v1902_v14  ;;  %v1830_v24 = vld [vmem:[#allocation5 + $0x2b0] sm:$0xf]  ;;  %v2233_v25 = vld [vmem:[#allocation5 + $0x2b4] sm:$0xf0]  ;;  %v1531_v28 = vor.u32 %v2156_v20, %v1528_v21  ;;  %v1767_v29 = vor.u32 %v2217_v23, %v1766_v19  ;;  %v1758_v31 = vld [vmem:[#allocation5 + $0x220] sm:$0xf] }
  0x41   :  { %886 = vmatpush.bf16.msra.mxu3 %v1687_v44  ;;  %849 = vmatmul.bf16.vlgmr.msra.gmra.mxu0 %v2607_v1  ;;  %v1894_v26 = vld [vmem:[#allocation5 + $0x330] sm:$0xf]  ;;  %v2249_v27 = vld [vmem:[#allocation5 + $0x334] sm:$0xf0]  ;;  %v1831_v30 = vor.u32 %v2233_v25, %v1830_v24  ;;  %v2154_v32 = vld [vmem:[#allocation5 + $0x44] sm:$0xf] }
  0x42   :  { %893 = vmatpush.bf16.msrb.mxu0 %v1799_v34  ;;  %862 = vmatmul.bf16.vlgmr.msra.gmra.mxu1 %v2609_v2  ;;  %v1520_v33 = vld [vmem:[#allocation5 + $0x48] sm:$0xf0]  ;;  %v1895_v34 = vor.u32 %v2249_v27, %v1894_v26  ;;  %v1822_v36 = vld [vmem:[#allocation5 + $0x2a0] sm:$0xf]  ;;  %v2231_v37 = vld [vmem:[#allocation5 + $0x2a4] sm:$0xf0] }
  0x43   :  { %906 = vmatpush.bf16.msrb.mxu1 %v1863_v35  ;;  %875 = vmatmul.bf16.vlgmr.msra.gmra.mxu2 %v2604_v54  ;;  %v2215_v35 = vld [vmem:[#allocation5 + $0x224] sm:$0xf0]  ;;  %v1523_v40 = vor.u32 %v2154_v32, %v1520_v33  ;;  %v1823_v42 = vor.u32 %v2231_v37, %v1822_v36  ;;  %v1750_v43 = vld [vmem:[#allocation5 + $0x210] sm:$0xf]  ;;  %v2152_v44 = vld [vmem:[#allocation5 + $0x34] sm:$0xf] }
  0x44   :  { %919 = vmatpush.bf16.msrb.mxu2 %v1927_v38  ;;  %v1886_v38 = vld [vmem:[#allocation5 + $0x320] sm:$0xf]  ;;  %v2247_v39 = vld [vmem:[#allocation5 + $0x324] sm:$0xf0]  ;;  %v1759_v41 = vor.u32 %v2215_v35, %v1758_v31  ;;  %v1512_v45 = vld [vmem:[#allocation5 + $0x38] sm:$0xf0] }
  0x45   :  { %887 = vmatpush.bf16.msra.mxu3 %v1679_v0  ;;  %v2213_v47 = vld [vmem:[#allocation5 + $0x214] sm:$0xf0]  ;;  %v1814_v48 = vld [vmem:[#allocation5 + $0x290] sm:$0xf]  ;;  %v1742_v52 = vld [vmem:[#allocation5 + $0x200] sm:$0xf] }
  0x46   :  { %894 = vmatpush.bf16.msrb.mxu0 %v1791_v46  ;;  %v1887_v46 = vor.u32 %v2247_v39, %v1886_v38  ;;  %v2229_v49 = vld [vmem:[#allocation5 + $0x294] sm:$0xf0]  ;;  %v2211_v53 = vld [vmem:[#allocation5 + $0x204] sm:$0xf0]  ;;  %v1806_v55 = vld [vmem:[#allocation5 + $0x280] sm:$0xf]  ;;  %v1751_v58 = vor.u32 %v2213_v47, %v1750_v43 }
  0x47   :  { %907 = vmatpush.bf16.msrb.mxu1 %v1855_v50  ;;  %v1878_v50 = vld [vmem:[#allocation5 + $0x310] sm:$0xf]  ;;  %v2245_v51 = vld [vmem:[#allocation5 + $0x314] sm:$0xf0]  ;;  %v2227_v56 = vld [vmem:[#allocation5 + $0x284] sm:$0xf0]  ;;  %v1815_v59 = vor.u32 %v2229_v49, %v1814_v48  ;;  %v1743_v15 = vor.u32 %v2211_v53, %v1742_v52 }
  0x48   :  { %920 = vmatpush.bf16.msrb.mxu2 %v1919_v57  ;;  %888 = vmatmul.bf16.vlgmr.msra.gmra.mxu3 %v2612_v13  ;;  %v1515_v57 = vor.u32 %v2152_v44, %v1512_v45  ;;  %v136_v60 = vld [vmem:[#allocation2 + $0x10] sm:$0xff]  ;;  %v2150_v61 = vld [vmem:[#allocation5 + $0x24] sm:$0xf]  ;;  %v1504_v62 = vld [vmem:[#allocation5 + $0x28] sm:$0xf0]  ;;  %v1879_v63 = vor.u32 %v2245_v51, %v1878_v50  ;;  %s1471_s26 = sshll.u32 %s2671_s9, 4  ;;  %s1472_s26 = int_to_ptr.hbm [resolvable:$true] %s1471_s26 }
  0x49   :  { %932 = vmatpush.bf16.msrb.mxu3 %v1547_v3  ;;  %v1870_v0 = vld [vmem:[#allocation5 + $0x300] sm:$0xf]  ;;  %v2243_v3 = vld [vmem:[#allocation5 + $0x304] sm:$0xf0]  ;;  %v1608_v6 = vld [vmem:[#allocation5 + $0xf8] sm:$0xf0]  ;;  %v1507_v10 = vor.u32 %v2150_v61, %v1504_v62  ;;  %v265_v11 = vunpack.c.h.b16 %v136_v60 }
  0x4a   :  { %895 = vmatpush.bf16.msrb.mxu0 %v1783_v4  ;;  %v137_v4 = vld [vmem:[#allocation2 + $0x18] sm:$0xf]  ;;  %v2192_v7 = vld [vmem:[#allocation5 + $0x174] sm:$0xf]  ;;  %v2174_v23 = vld [vmem:[#allocation5 + $0xe4] sm:$0xf] }
  0x4b   :  { %908 = vmatpush.bf16.msrb.mxu1 %v1847_v5  ;;  %v2176_v5 = vld [vmem:[#allocation5 + $0xf4] sm:$0xf]  ;;  %v1672_v8 = vld [vmem:[#allocation5 + $0x178] sm:$0xf0]  ;;  %v1600_v24 = vld [vmem:[#allocation5 + $0xe8] sm:$0xf0] }
  0x4c   :  { %921 = vmatpush.bf16.msrb.mxu2 %v1911_v9  ;;  %v264_v9 = vunpack.c.l.b16 %v136_v60  ;;  %v2208_v12 = vld [vmem:[#allocation5 + $0x1f4] sm:$0xf]  ;;  %v1736_v14 = vld [vmem:[#allocation5 + $0x1f8] sm:$0xf0]  ;;  %v1611_v19 = vor.u32 %v2176_v5, %v1608_v6  ;;  %v2190_v25 = vld [vmem:[#allocation5 + $0x164] sm:$0xf]  ;;  %v1603_v35 = vor.u32 %v2174_v23, %v1600_v24 }
  0x4d   :  { %933 = vmatpush.bf16.msrb.mxu3 %v1539_v16  ;;  %v1807_v16 = vor.u32 %v2227_v56, %v1806_v55  ;;  %v2148_v20 = vld [vmem:[#allocation5 + $0x14] sm:$0xf]  ;;  %v1496_v21 = vld [vmem:[#allocation5 + $0x18] sm:$0xf0]  ;;  %v1739_v26 = vor.u32 %v2208_v12, %v1736_v14  ;;  %v1728_v31 = vld [vmem:[#allocation5 + $0x1e8] sm:$0xf0] }
  0x4e   :  { %896 = vmatpush.bf16.msrb.mxu0 %v1775_v17  ;;  %v266_v17 = vunpack.c.l.b16 %v137_v4  ;;  %v2616_v27 = vpack.c.b16 %v264_v9, %v264_v9  ;;  %v1499_v33 = vor.u32 %v2148_v20, %v1496_v21  ;;  %v1592_v36 = vld [vmem:[#allocation5 + $0xd8] sm:$0xf0]  ;;  %v2146_v37 = vld [vmem:[#allocation5 + $0x4] sm:$0xf]  ;;  %v1488_v38 = vld [vmem:[#allocation5 + $0x8] sm:$0xf0] }
  0x4f   :  { %909 = vmatpush.bf16.msrb.mxu1 %v1839_v18  ;;  %v1871_v18 = vor.u32 %v2243_v3, %v1870_v0  ;;  %v1656_v44 = vld [vmem:[#allocation5 + $0x158] sm:$0xf0]  ;;  %v2204_v45 = vld [vmem:[#allocation5 + $0x1d4] sm:$0xf]  ;;  %v1491_v47 = vor.u32 %v2146_v37, %v1488_v38  ;;  %v2170_v49 = vld [vmem:[#allocation5 + $0xc4] sm:$0xf] }
  0x50   :  { %922 = vmatpush.bf16.msrb.mxu2 %v1903_v22  ;;  %v1675_v22 = vor.u32 %v2192_v7, %v1672_v8  ;;  %v2620_v32 = vpack.c.b16 %v266_v17, %v266_v17  ;;  %v1584_v50 = vld [vmem:[#allocation5 + $0xc8] sm:$0xf0]  ;;  %v2186_v53 = vld [vmem:[#allocation5 + $0x144] sm:$0xf]  ;;  %v2168_v62 = vld [vmem:[#allocation5 + $0xb4] sm:$0xf] }
  0x51   :  { %934 = vmatpush.bf16.msrb.mxu3 %v1531_v28  ;;  %v1664_v28 = vld [vmem:[#allocation5 + $0x168] sm:$0xf0]  ;;  %v2222_v55 = vld [vmem:[#allocation5 + $0x264] sm:$0xf]  ;;  %v1587_v61 = vor.u32 %v2170_v49, %v1584_v50  ;;  %v2184_v4 = vld [vmem:[#allocation5 + $0x134] sm:$0xf] }
  0x52   :  { %897 = vmatpush.bf16.msrb.mxu0 %v1767_v29  ;;  %v2618_v29 = vpack.c.b16 %v265_v11, %v265_v11  ;;  %v1667_v39 = vor.u32 %v2190_v25, %v1664_v28  ;;  %v1792_v56 = vld [vmem:[#allocation5 + $0x268] sm:$0xf0]  ;;  %v2220_v5 = vld [vmem:[#allocation5 + $0x254] sm:$0xf]  ;;  %v1784_v6 = vld [vmem:[#allocation5 + $0x258] sm:$0xf0] }
  0x53   :  { %910 = vmatpush.bf16.msrb.mxu1 %v1831_v30  ;;  %v2206_v30 = vld [vmem:[#allocation5 + $0x1e4] sm:$0xf]  ;;  %v1712_v60 = vld [vmem:[#allocation5 + $0x1c8] sm:$0xf0]  ;;  %v1795_v0 = vor.u32 %v2222_v55, %v1792_v56  ;;  %v1640_v8 = vld [vmem:[#allocation5 + $0x138] sm:$0xf0] }
  0x54   :  { %923 = vmatpush.bf16.msrb.mxu2 %v1895_v34  ;;  %v2172_v34 = vld [vmem:[#allocation5 + $0xd4] sm:$0xf]  ;;  %v1731_v43 = vor.u32 %v2206_v30, %v1728_v31  ;;  %v2166_v12 = vld [vmem:[#allocation5 + $0xa4] sm:$0xf]  ;;  %v1568_v14 = vld [vmem:[#allocation5 + $0xa8] sm:$0xf0] }
  0x55   :  { %935 = vmatpush.bf16.msrb.mxu3 %v1523_v40  ;;  %v2188_v40 = vld [vmem:[#allocation5 + $0x154] sm:$0xf]  ;;  %v1595_v48 = vor.u32 %v2172_v34, %v1592_v36  ;;  %v2182_v17 = vld [vmem:[#allocation5 + $0x124] sm:$0xf]  ;;  %v1632_v21 = vld [vmem:[#allocation5 + $0x128] sm:$0xf0]  ;;  %v1571_v24 = vor.u32 %v2166_v12, %v1568_v14 }
  0x56   :  { %898 = vmatpush.bf16.msrb.mxu0 %v1759_v41  ;;  %v2224_v41 = vld [vmem:[#allocation5 + $0x274] sm:$0xf]  ;;  %v1659_v52 = vor.u32 %v2188_v40, %v1656_v44  ;;  %v1696_v23 = vld [vmem:[#allocation5 + $0x1a8] sm:$0xf0]  ;;  %v1560_v25 = vld [vmem:[#allocation5 + $0x98] sm:$0xf0]  ;;  %v1635_v28 = vor.u32 %v2182_v17, %v1632_v21 }
  0x57   :  { %911 = vmatpush.bf16.msrb.mxu1 %v1823_v42  ;;  %v1800_v42 = vld [vmem:[#allocation5 + $0x278] sm:$0xf0]  ;;  %v2200_v9 = vld [vmem:[#allocation5 + $0x1b4] sm:$0xf]  ;;  %v1552_v40 = vld [vmem:[#allocation5 + $0x88] sm:$0xf0] }
  0x58   :  { %924 = vmatpush.bf16.msrb.mxu2 %v1887_v46  ;;  %v1720_v46 = vld [vmem:[#allocation5 + $0x1d8] sm:$0xf0]  ;;  %v1803_v51 = vor.u32 %v2224_v41, %v1800_v42  ;;  %v2180_v30 = vld [vmem:[#allocation5 + $0x114] sm:$0xf]  ;;  %v2178_v41 = vld [vmem:[#allocation5 + $0x104] sm:$0xf] }
  0x59   :  { %936 = vmatpush.bf16.msrb.mxu3 %v1515_v57  ;;  %v1723_v57 = vor.u32 %v2204_v45, %v1720_v46  ;;  %v2216_v31 = vld [vmem:[#allocation5 + $0x234] sm:$0xf]  ;;  %v1688_v37 = vld [vmem:[#allocation5 + $0x198] sm:$0xf0]  ;;  %v1616_v44 = vld [vmem:[#allocation5 + $0x108] sm:$0xf0] }
  0x5a   :  { %899 = vmatpush.bf16.msrb.mxu0 %v1751_v58  ;;  %v1648_v58 = vld [vmem:[#allocation5 + $0x148] sm:$0xf0]  ;;  %v2196_v36 = vld [vmem:[#allocation5 + $0x194] sm:$0xf]  ;;  %v2214_v45 = vld [vmem:[#allocation5 + $0x224] sm:$0xf] }
  0x5b   :  { %912 = vmatpush.bf16.msrb.mxu1 %v1815_v59  ;;  %v2202_v59 = vld [vmem:[#allocation5 + $0x1c4] sm:$0xf]  ;;  %v1651_v3 = vor.u32 %v2186_v53, %v1648_v58  ;;  %v1760_v46 = vld [vmem:[#allocation5 + $0x228] sm:$0xf0]  ;;  %v1864_v49 = vld [vmem:[#allocation5 + $0x2f8] sm:$0xf0] }
  0x5c   :  { %925 = vmatpush.bf16.msrb.mxu2 %v1879_v63  ;;  %v1576_v63 = vld [vmem:[#allocation5 + $0xb8] sm:$0xf0]  ;;  %v1715_v7 = vor.u32 %v2202_v59, %v1712_v60  ;;  %v2256_v50 = vld [vmem:[#allocation5 + $0x374] sm:$0xf]  ;;  %v1680_v53 = vld [vmem:[#allocation5 + $0x188] sm:$0xf0]  ;;  %v1763_v56 = vor.u32 %v2214_v45, %v1760_v46 }
  0x5d   :  { %937 = vmatpush.bf16.msrb.mxu3 %v1507_v10  ;;  %v1704_v10 = vld [vmem:[#allocation5 + $0x1b8] sm:$0xf0]  ;;  %v1579_v11 = vor.u32 %v2168_v62, %v1576_v63  ;;  %v2212_v59 = vld [vmem:[#allocation5 + $0x214] sm:$0xf]  ;;  %v2238_v62 = vld [vmem:[#allocation5 + $0x2e4] sm:$0xf] }
  0x5e   :  { %900 = vmatpush.bf16.msrb.mxu0 %v1743_v15  ;;  %v1787_v15 = vor.u32 %v2220_v5, %v1784_v6  ;;  %v1707_v20 = vor.u32 %v2200_v9, %v1704_v10  ;;  %v1752_v60 = vld [vmem:[#allocation5 + $0x218] sm:$0xf0]  ;;  %v1856_v63 = vld [vmem:[#allocation5 + $0x2e8] sm:$0xf0]  ;;  %v2210_v6 = vld [vmem:[#allocation5 + $0x204] sm:$0xf] }
  0x5f   :  { %913 = vmatpush.bf16.msrb.mxu1 %v1807_v16  ;;  %v1643_v16 = vor.u32 %v2184_v4, %v1640_v8  ;;  %v1920_v4 = vld [vmem:[#allocation5 + $0x368] sm:$0xf0]  ;;  %v1755_v5 = vor.u32 %v2212_v59, %v1752_v60  ;;  %v1992_v9 = vld [vmem:[#allocation8 + $0x70] sm:$0xf]  ;;  %v2273_v10 = vld [vmem:[#allocation8 + $0x74] sm:$0xf0] }
  0x60   :  { %926 = vmatpush.bf16.msrb.mxu2 %v1871_v18  ;;  %v2218_v18 = vld [vmem:[#allocation5 + $0x244] sm:$0xf]  ;;  %v1744_v8 = vld [vmem:[#allocation5 + $0x208] sm:$0xf0]  ;;  %v2236_v12 = vld [vmem:[#allocation5 + $0x2d4] sm:$0xf] }
  0x61   :  { %901 = vmatmul.bf16.vlgmr.msrb.gmra.mxu0 %v2616_v27  ;;  %938 = vmatpush.bf16.msrb.mxu3 %v1499_v33  ;;  %v1768_v33 = vld [vmem:[#allocation5 + $0x238] sm:$0xf0]  ;;  %v2234_v21 = vld [vmem:[#allocation5 + $0x2c4] sm:$0xf]  ;;  %v1872_v46 = vld [vmem:[#allocation5 + $0x308] sm:$0xf0] }
  0x62   :  { %945 = vmatpush.bf16.msra.mxu0 %v1611_v19  ;;  %914 = vmatmul.bf16.vlgmr.msrb.gmra.mxu1 %v2618_v29  ;;  %v1776_v19 = vld [vmem:[#allocation5 + $0x248] sm:$0xf0]  ;;  %v1771_v42 = vor.u32 %v2216_v31, %v1768_v33  ;;  %v1848_v14 = vld [vmem:[#allocation5 + $0x2d8] sm:$0xf0]  ;;  %v2230_v31 = vld [vmem:[#allocation5 + $0x2a4] sm:$0xf] }
  0x63   :  { %958 = vmatpush.bf16.msra.mxu1 %v1675_v22  ;;  %927 = vmatmul.bf16.vlgmr.msrb.gmra.mxu2 %v2620_v32  ;;  %v2198_v22 = vld [vmem:[#allocation5 + $0x1a4] sm:$0xf]  ;;  %v1912_v17 = vld [vmem:[#allocation5 + $0x358] sm:$0xf0]  ;;  %v1824_v33 = vld [vmem:[#allocation5 + $0x2a8] sm:$0xf0] }
  0x64   :  { %971 = vmatpush.bf16.msra.mxu2 %v1739_v26  ;;  %v1779_v26 = vor.u32 %v2218_v18, %v1776_v19  ;;  %v1699_v34 = vor.u32 %v2198_v22, %v1696_v23  ;;  %v1747_v18 = vor.u32 %v2210_v6, %v1744_v8  ;;  %v1851_v19 = vor.u32 %v2236_v12, %v1848_v14  ;;  %v1840_v22 = vld [vmem:[#allocation5 + $0x2c8] sm:$0xf0]  ;;  %v2250_v23 = vld [vmem:[#allocation5 + $0x344] sm:$0xf]  ;;  %v1976_v59 = vld [vmem:[#allocation8 + $0x50] sm:$0xf] }
  0x65   :  { %939 = vmatpush.bf16.msrb.mxu3 %v1491_v47  ;;  %v1691_v47 = vor.u32 %v2196_v36, %v1688_v37  ;;  %v1827_v36 = vor.u32 %v2230_v31, %v1824_v33  ;;  %v2242_v45 = vld [vmem:[#allocation5 + $0x304] sm:$0xf]  ;;  %v2269_v60 = vld [vmem:[#allocation8 + $0x54] sm:$0xf0]  ;;  %v1938_v33 = vld [vmem:[#allocation8 + $0x8] sm:$0xf0] }
  0x66   :  { %946 = vmatpush.bf16.msra.mxu0 %v1603_v35  ;;  %v1624_v35 = vld [vmem:[#allocation5 + $0x118] sm:$0xf0]  ;;  %v1952_v14 = vld [vmem:[#allocation8 + $0x20] sm:$0xf] }
  0x67   :  { %959 = vmatpush.bf16.msra.mxu1 %v1667_v39  ;;  %v2162_v39 = vld [vmem:[#allocation5 + $0x84] sm:$0xf]  ;;  %v2265_v8 = vld [vmem:[#allocation8 + $0x34] sm:$0xf0] }
  0x68   :  { %972 = vmatpush.bf16.msra.mxu2 %v1731_v43  ;;  %940 = vmatmul.bf16.vlgmr.msrb.gmra.mxu3 %v2607_v1  ;;  %v2164_v1 = vld [vmem:[#allocation5 + $0x94] sm:$0xf]  ;;  %v1627_v43 = vor.u32 %v2180_v30, %v1624_v35  ;;  %v1555_v55 = vor.u32 %v2162_v39, %v1552_v40  ;;  %v1888_v35 = vld [vmem:[#allocation5 + $0x328] sm:$0xf0]  ;;  %v1816_v39 = vld [vmem:[#allocation5 + $0x298] sm:$0xf0] }
  0x69   :  { %984 = vmatpush.bf16.msra.mxu3 %v1803_v51  ;;  %v1563_v38 = vor.u32 %v2164_v1, %v1560_v25  ;;  %v1928_v51 = vld [vmem:[#allocation5 + $0x378] sm:$0xf0]  ;;  %v2232_v25 = vld [vmem:[#allocation5 + $0x2b4] sm:$0xf] }
  0x6a   :  { %947 = vmatpush.bf16.msra.mxu0 %v1595_v48  ;;  %v2240_v48 = vld [vmem:[#allocation5 + $0x2f4] sm:$0xf] }
  0x6b   :  { %960 = vmatpush.bf16.msra.mxu1 %v1659_v52  ;;  %v2194_v52 = vld [vmem:[#allocation5 + $0x184] sm:$0xf]  ;;  %v1867_v58 = vor.u32 %v2240_v48, %v1864_v49  ;;  %v2244_v40 = vld [vmem:[#allocation5 + $0x314] sm:$0xf]  ;;  %v1994_v48 = vld [vmem:[#allocation8 + $0x78] sm:$0xf0] }
  0x6c   :  { %973 = vmatpush.bf16.msra.mxu2 %v1723_v57  ;;  %v1619_v57 = vor.u32 %v2178_v41, %v1616_v44  ;;  %v1880_v41 = vld [vmem:[#allocation5 + $0x318] sm:$0xf0]  ;;  %v1808_v44 = vld [vmem:[#allocation5 + $0x288] sm:$0xf0] }
  0x6d   :  { %985 = vmatpush.bf16.msra.mxu3 %v1795_v0  ;;  %v1683_v0 = vor.u32 %v2194_v52, %v1680_v53  ;;  %v1984_v52 = vld [vmem:[#allocation8 + $0x60] sm:$0xf]  ;;  %v2271_v53 = vld [vmem:[#allocation8 + $0x64] sm:$0xf0] }
  0x6e   :  { %948 = vmatpush.bf16.msra.mxu0 %v1587_v61  ;;  %v1931_v61 = vor.u32 %v2256_v50, %v1928_v51  ;;  %v1875_v50 = vor.u32 %v2242_v45, %v1872_v46  ;;  %v2056_v46 = vld [vmem:[#allocation8 + $0xf0] sm:$0xf] }
  0x6f   :  { %961 = vmatpush.bf16.msra.mxu1 %v1651_v3  ;;  %v2254_v3 = vld [vmem:[#allocation5 + $0x364] sm:$0xf] }
  0x70   :  { %974 = vmatpush.bf16.msra.mxu2 %v1715_v7  ;;  %v1859_v7 = vor.u32 %v2238_v62, %v1856_v63  ;;  %v1977_v62 = vor.u32 %v2269_v60, %v1976_v59  ;;  %v1978_v63 = vld [vmem:[#allocation8 + $0x58] sm:$0xf0]  ;;  %v2286_v59 = vld [vmem:[#allocation8 + $0xe4] sm:$0xf] }
  0x71   :  { %986 = vmatpush.bf16.msra.mxu3 %v1787_v15  ;;  %v1993_v15 = vor.u32 %v2273_v10, %v1992_v9  ;;  %v2264_v9 = vld [vmem:[#allocation8 + $0x34] sm:$0xf]  ;;  %v1962_v10 = vld [vmem:[#allocation8 + $0x38] sm:$0xf0] }
  0x72   :  { %949 = vmatpush.bf16.msra.mxu0 %v1579_v11  ;;  %v1923_v11 = vor.u32 %v2254_v3, %v1920_v4  ;;  %v1968_v3 = vld [vmem:[#allocation8 + $0x40] sm:$0xf]  ;;  %v2267_v4 = vld [vmem:[#allocation8 + $0x44] sm:$0xf0]  ;;  %v1965_v12 = vor.u32 %v2264_v9, %v1962_v10 }
  0x73   :  { %962 = vmatpush.bf16.msra.mxu1 %v1643_v16  ;;  %v2252_v16 = vld [vmem:[#allocation5 + $0x354] sm:$0xf] }
  0x74   :  { %975 = vmatpush.bf16.msra.mxu2 %v1707_v20  ;;  %v1915_v20 = vor.u32 %v2252_v16, %v1912_v17  ;;  %v2262_v16 = vld [vmem:[#allocation8 + $0x24] sm:$0xf] }
  0x75   :  { %987 = vmatpush.bf16.msra.mxu3 %v1779_v26  ;;  %v1832_v26 = vld [vmem:[#allocation5 + $0x2b8] sm:$0xf0] }
  0x76   :  { %950 = vmatpush.bf16.msra.mxu0 %v1571_v24  ;;  %v1904_v24 = vld [vmem:[#allocation5 + $0x348] sm:$0xf0] }
  0x77   :  { %963 = vmatpush.bf16.msra.mxu1 %v1635_v28  ;;  %v1907_v1 = vor.u32 %v2250_v23, %v1904_v24  ;;  %v1896_v28 = vld [vmem:[#allocation5 + $0x338] sm:$0xf0]  ;;  %v2260_v23 = vld [vmem:[#allocation8 + $0x14] sm:$0xf] }
  0x78   :  { %976 = vmatpush.bf16.msra.mxu2 %v1699_v34  ;;  %v2246_v34 = vld [vmem:[#allocation5 + $0x324] sm:$0xf] }
  0x79   :  { %988 = vmatpush.bf16.msra.mxu3 %v1771_v42  ;;  %v1891_v37 = vor.u32 %v2246_v34, %v1888_v35  ;;  %v1883_v42 = vor.u32 %v2244_v40, %v1880_v41 }
  0x7a   :  { %951 = vmatpush.bf16.msra.mxu0 %v1563_v38  ;;  %v2228_v38 = vld [vmem:[#allocation5 + $0x294] sm:$0xf] }
  0x7b   :  { %964 = vmatpush.bf16.msra.mxu1 %v1627_v43  ;;  %v2226_v43 = vld [vmem:[#allocation5 + $0x284] sm:$0xf] }
  0x7c   :  { %977 = vmatpush.bf16.msra.mxu2 %v1691_v47  ;;  %v2272_v47 = vld [vmem:[#allocation8 + $0x74] sm:$0xf]  ;;  %v1811_v49 = vor.u32 %v2226_v43, %v1808_v44 }
  0x7d   :  { %989 = vmatpush.bf16.msra.mxu3 %v1763_v56  ;;  %v1997_v51 = vor.u32 %v2272_v47, %v1994_v48  ;;  %v1985_v56 = vor.u32 %v2271_v53, %v1984_v52  ;;  %v2289_v47 = vld [vmem:[#allocation8 + $0xf4] sm:$0xf0]  ;;  %v2288_v48 = vld [vmem:[#allocation8 + $0xf4] sm:$0xf]  ;;  %v2058_v52 = vld [vmem:[#allocation8 + $0xf8] sm:$0xf0] }
  0x7e   :  { %952 = vmatpush.bf16.msra.mxu0 %v1555_v55  ;;  %v2270_v55 = vld [vmem:[#allocation8 + $0x64] sm:$0xf]  ;;  %v2061_v53 = vor.u32 %v2288_v48, %v2058_v52 }
  0x7f   :  { %965 = vmatpush.bf16.msra.mxu1 %v1619_v57  ;;  %v1986_v57 = vld [vmem:[#allocation8 + $0x68] sm:$0xf0] }
  0x80   :  { %978 = vmatpush.bf16.msra.mxu2 %v1683_v0 }
  0x81   :  { %953 = vmatmul.bf16.vlgmr.msra.gmra.mxu0 %v2609_v2  ;;  %990 = vmatpush.bf16.msra.mxu3 %v1755_v5  ;;  %v1843_v2 = vor.u32 %v2234_v21, %v1840_v22  ;;  %v2266_v5 = vld [vmem:[#allocation8 + $0x44] sm:$0xf]  ;;  %v1944_v21 = vld [vmem:[#allocation8 + $0x10] sm:$0xf]  ;;  %v2261_v22 = vld [vmem:[#allocation8 + $0x14] sm:$0xf0] }
  0x82   :  { %997 = vmatpush.bf16.msrb.mxu0 %v1867_v58  ;;  %966 = vmatmul.bf16.vlgmr.msra.gmra.mxu1 %v2604_v54  ;;  %v2248_v54 = vld [vmem:[#allocation5 + $0x334] sm:$0xf]  ;;  %v1989_v58 = vor.u32 %v2270_v55, %v1986_v57  ;;  %v2048_v57 = vld [vmem:[#allocation8 + $0xe0] sm:$0xf] }
  0x83   :  { %1010 = vmatpush.bf16.msrb.mxu1 %v1931_v61  ;;  %979 = vmatmul.bf16.vlgmr.msra.gmra.mxu2 %v2612_v13  ;;  %v1835_v13 = vor.u32 %v2232_v25, %v1832_v26  ;;  %v1899_v30 = vor.u32 %v2248_v54, %v1896_v28  ;;  %v2268_v61 = vld [vmem:[#allocation8 + $0x54] sm:$0xf]  ;;  %v2632_v26 = vld [vmem:[#allocation7] sm:$0x3]  ;;  %v1936_v28 = vld [vmem:[#allocation8] sm:$0xf] }
  0x84   :  { %1237 = vmatpush.bf16.msrb.mxu2 %v1993_v15  ;;  %v1981_v0 = vor.u32 %v2268_v61, %v1978_v63  ;;  %v2263_v15 = vld [vmem:[#allocation8 + $0x24] sm:$0xf0]  ;;  %v252_v35 = vperm.slane %v2632_v26, 0  ;;  %v2050_v61 = vld [vmem:[#allocation8 + $0xe8] sm:$0xf0]  ;;  %v253_v48 = vperm.slane %v2632_v26, 1 }
  0x85   :  { %991 = vmatpush.bf16.msra.mxu3 %v1747_v18  ;;  %v1953_v17 = vor.u32 %v2263_v15, %v1952_v14  ;;  %v1954_v18 = vld [vmem:[#allocation8 + $0x28] sm:$0xf0]  ;;  %v2285_v63 = vld [vmem:[#allocation8 + $0xd4] sm:$0xf0]  ;;  %v2283_v14 = vld [vmem:[#allocation8 + $0xc4] sm:$0xf0] }
  0x86   :  { %998 = vmatpush.bf16.msrb.mxu0 %v1859_v7  ;;  %v1960_v7 = vld [vmem:[#allocation8 + $0x30] sm:$0xf] }
  0x87   :  { %1011 = vmatpush.bf16.msrb.mxu1 %v1923_v11  ;;  %v1961_v11 = vor.u32 %v2265_v8, %v1960_v7  ;;  %v2297_v8 = vld [vmem:[#allocation10 + $0x38] sm:$0xff] }
  0x88   :  { %992 = vmatmul.bf16.vlgmr.msra.gmra.mxu3 %v2616_v27  ;;  %v1819_v27 = vor.u32 %v2228_v38, %v1816_v39  ;;  %1238 = vmatpush.bf16.msrb.mxu2 %v1985_v56 }
  0x8a   :  { %999 = vmatpush.bf16.msrb.mxu0 %v1851_v19  ;;  %v1957_v19 = vor.u32 %v2262_v16, %v1954_v18  ;;  %v2282_v16 = vld [vmem:[#allocation8 + $0xc4] sm:$0xf]  ;;  %v2024_v18 = vld [vmem:[#allocation8 + $0xb0] sm:$0xf] }
  0x8b   :  { %1012 = vmatpush.bf16.msrb.mxu1 %v1915_v20 }
  0x8c   :  { %1239 = vmatpush.bf16.msrb.mxu2 %v1977_v62  ;;  %v2040_v62 = vld [vmem:[#allocation8 + $0xd0] sm:$0xf] }
  0x8d   :  { %v2041_v7 = vor.u32 %v2285_v63, %v2040_v62 }
  0x8e   :  { %1000 = vmatpush.bf16.msrb.mxu0 %v1843_v2  ;;  %v1945_v2 = vor.u32 %v2261_v22, %v1944_v21  ;;  %v2281_v22 = vld [vmem:[#allocation8 + $0xb4] sm:$0xf0] }
  0x8f   :  { %1013 = vmatpush.bf16.msrb.mxu1 %v1907_v1  ;;  %v1946_v1 = vld [vmem:[#allocation8 + $0x18] sm:$0xf0] }
  0x90   :  { %v1949_v25 = vor.u32 %v2260_v23, %v1946_v1  ;;  %v2280_v23 = vld [vmem:[#allocation8 + $0xb4] sm:$0xf]  ;;  %v2025_v1 = vor.u32 %v2281_v22, %v2024_v18  ;;  %v2293_v22 = vld [vmem:[#allocation10 + $0x18] sm:$0xff] }
  0x91   :  { %v2300_v18 = vld [vmem:[#allocation10 + $0x50] sm:$0xff] }
  0x92   :  { %1001 = vmatpush.bf16.msrb.mxu0 %v1835_v13  ;;  %v2259_v13 = vld [vmem:[#allocation8 + $0x4] sm:$0xf0] }
  0x93   :  { %1014 = vmatpush.bf16.msrb.mxu1 %v1899_v30  ;;  %v2258_v30 = vld [vmem:[#allocation8 + $0x4] sm:$0xf]  ;;  %v1937_v31 = vor.u32 %v2259_v13, %v1936_v28  ;;  %v2016_v28 = vld [vmem:[#allocation8 + $0xa0] sm:$0xf]  ;;  %v2279_v13 = vld [vmem:[#allocation8 + $0xa4] sm:$0xf0] }
  0x94   :  { %v1941_v34 = vor.u32 %v2258_v30, %v1938_v33  ;;  %v2278_v30 = vld [vmem:[#allocation8 + $0xa4] sm:$0xf]  ;;  %v2018_v33 = vld [vmem:[#allocation8 + $0xa8] sm:$0xf0] }
  0x96   :  { %1002 = vmatpush.bf16.msrb.mxu0 %v1827_v36 }
  0x97   :  { %1015 = vmatpush.bf16.msrb.mxu1 %v1891_v37 }
  0x9a   :  { %1003 = vmatpush.bf16.msrb.mxu0 %v1819_v27 }
  0x9b   :  { %1016 = vmatpush.bf16.msrb.mxu1 %v1883_v42 }
  0x9e   :  { %1004 = vmatpush.bf16.msrb.mxu0 %v1811_v49 }
  0x9f   :  { %1017 = vmatpush.bf16.msrb.mxu1 %v1875_v50  ;;  %v1025_v50 = vld [vmem:[#allocation11] sm:$0xff] }
  0xa0   :  { %v1932_v56 = vxor.u32 2147483648, %v1025_v50 }
  0xa1   :  { %1005 = vmatmul.bf16.vlgmr.msrb.gmra.mxu0 %v2618_v29  ;;  %v1969_v29 = vor.u32 %v2267_v4, %v1968_v3  ;;  %v2053_v3 = vor.u32 %v2286_v59, %v2050_v61  ;;  %v2284_v4 = vld [vmem:[#allocation8 + $0xd4] sm:$0xf] }
  0xa2   :  { %1263 = vmatpush.bf16.msra.mxu0 %v1997_v51  ;;  %1018 = vmatmul.bf16.vlgmr.msrb.gmra.mxu1 %v2620_v32  ;;  %v1970_v32 = vld [vmem:[#allocation8 + $0x48] sm:$0xf0]  ;;  %v2057_v51 = vor.u32 %v2289_v47, %v2056_v46  ;;  %vm2635_vm0 = vcmp.lt.s32.totalorder %v1932_v56, 0 }
  0xa3   :  { %v1973_v6 = vor.u32 %v2266_v5, %v1970_v32  ;;  %1240 = vmatpush.bf16.msrb.mxu2 %v1969_v29  ;;  %1276 = vmatpush.bf16.msra.mxu1 %v2061_v53  ;;  %v2042_v5 = vld [vmem:[#allocation8 + $0xd8] sm:$0xf0]  ;;  %vm2062_vm1 = vmpackc.low %vm2635_vm0, %vm2635_vm0  ;;  %v2002_v46 = vld [vmem:[#allocation8 + $0x88] sm:$0xf0] }
  0xa4   :  { %1250 = vmatpush.bf16.msrb.mxu3 %v2057_v51  ;;  %v2045_v9 = vor.u32 %v2284_v4, %v2042_v5 }
  0xa6   :  { %1264 = vmatpush.bf16.msra.mxu0 %v1989_v58  ;;  %v2287_v58 = vld [vmem:[#allocation8 + $0xe4] sm:$0xf0] }
  0xa7   :  { %1241 = vmatpush.bf16.msrb.mxu2 %v1961_v11  ;;  %v2049_v60 = vor.u32 %v2287_v58, %v2048_v57  ;;  %1277 = vmatpush.bf16.msra.mxu1 %v2053_v3 }
  0xa9   :  { %1251 = vmatpush.bf16.msrb.mxu3 %v2049_v60  ;;  %v1026_v60 = vld [vmem:[#allocation11 + $0x8] sm:$0xff] }
  0xaa   :  { %1265 = vmatpush.bf16.msra.mxu0 %v1981_v0  ;;  %v1933_v3 = vxor.u32 2147483648, %v1026_v60 }
  0xab   :  { %1242 = vmatpush.bf16.msrb.mxu2 %v1953_v17  ;;  %1278 = vmatpush.bf16.msra.mxu1 %v2045_v9  ;;  %v2034_v17 = vld [vmem:[#allocation8 + $0xc8] sm:$0xf0]  ;;  %v2304_v9 = vld [vmem:[#allocation10 + $0x70] sm:$0xff] }
  0xac   :  { %v2037_v21 = vor.u32 %v2282_v16, %v2034_v17  ;;  %vm1032_vm2 = vcmp.lt.s32.totalorder %v1933_v3, 0  ;;  %v2301_v16 = vld [vmem:[#allocation10 + $0x58] sm:$0xff] }
  0xad   :  { %1252 = vmatpush.bf16.msrb.mxu3 %v2041_v7  ;;  %vm2065_vm3 = vmpackc.low %vm1032_vm2, %vm1032_vm2  ;;  %v2305_v7 = vld [vmem:[#allocation10 + $0x78] sm:$0xff] }
  0xae   :  { %1266 = vmatpush.bf16.msra.mxu0 %v1973_v6 }
  0xaf   :  { %1243 = vmatpush.bf16.msrb.mxu2 %v1945_v2  ;;  %1279 = vmatpush.bf16.msra.mxu1 %v2037_v21 }
  0xb2   :  { %1267 = vmatpush.bf16.msra.mxu0 %v1965_v12  ;;  %v2032_v12 = vld [vmem:[#allocation8 + $0xc0] sm:$0xf] }
  0xb3   :  { %1244 = vmatpush.bf16.msrb.mxu2 %v1937_v31  ;;  %v2033_v15 = vor.u32 %v2283_v14, %v2032_v12  ;;  %v2017_v31 = vor.u32 %v2279_v13, %v2016_v28  ;;  %v2295_v12 = vld [vmem:[#allocation10 + $0x28] sm:$0xff]  ;;  %v2302_v14 = vld [vmem:[#allocation10 + $0x60] sm:$0xff]  ;;  %v1292_v13 = vld [vmem:[#allocation13 + $0x8] sm:$0xff] }
  0xb5   :  { %1253 = vmatpush.bf16.msrb.mxu3 %v2033_v15  ;;  %v2294_v15 = vld [vmem:[#allocation10 + $0x20] sm:$0xff] }
  0xb6   :  { %1268 = vmatpush.bf16.msra.mxu0 %v1957_v19 }
  0xb7   :  { %1437 = vmatpush.bf16.msra.mxu2 %v2297_v8 }
  0xb9   :  { %1254 = vmatpush.bf16.msrb.mxu3 %v2025_v1  ;;  %v2291_v1 = vld [vmem:[#allocation10 + $0x8] sm:$0xff] }
  0xba   :  { %1269 = vmatpush.bf16.msra.mxu0 %v1949_v25 }
  0xbd   :  { %1255 = vmatpush.bf16.msrb.mxu3 %v2017_v31  ;;  %v2075_v31 = vxor.u32 2147483648, %v1292_v13 }
  0xbe   :  { %v850_v20 = vpop.f32.mrf.mxu0  ;;  %1270 = vmatpush.bf16.msra.mxu0 %v1941_v34  ;;  %v2021_v34 = vor.u32 %v2278_v30, %v2018_v33 }
  0xbf   :  { %v863_v24 = vpop.f32.mrf.mxu1  ;;  %v851_v39 = vadd.f32 %v850_v20, %v252_v35  ;;  %v2008_v35 = vld [vmem:[#allocation8 + $0x90] sm:$0xf]  ;;  %vm1298_vm4 = vcmp.lt.s32.totalorder %v2075_v31, 0 }
  0xc0   :  { %vm2143_vm5 = vmpackc.low %vm1298_vm4, %vm1298_vm4 }
  0xc1   :  { %v864_v41 = vadd.f32 %v863_v24, %v851_v39  ;;  %v2026_v24 = vld [vmem:[#allocation8 + $0xb8] sm:$0xf0] }
  0xc2   :  { %v2029_v25 = vor.u32 %v2280_v23, %v2026_v24  ;;  %v2299_v23 = vld [vmem:[#allocation10 + $0x48] sm:$0xff]  ;;  %v2292_v24 = vld [vmem:[#allocation10 + $0x10] sm:$0xff] }
  0xc4   :  { %1280 = vmatpush.bf16.msra.mxu1 %v2029_v25  ;;  %v2290_v25 = vld [vmem:[#allocation10] sm:$0xff] }
  0xc6   :  { %v876_v54 = vpop.f32.mrf.mxu2  ;;  %v852_v36 = vpop.f32.mrf.mxu0 }
  0xc7   :  { %v865_v37 = vpop.f32.mrf.mxu1  ;;  %v877_v42 = vadd.f32 %v876_v54, %v864_v41  ;;  %v2277_v36 = vld [vmem:[#allocation8 + $0x94] sm:$0xf0] }
  0xc8   :  { %1281 = vmatpush.bf16.msra.mxu1 %v2021_v34  ;;  %v2276_v37 = vld [vmem:[#allocation8 + $0x94] sm:$0xf]  ;;  %v2009_v39 = vor.u32 %v2277_v36, %v2008_v35 }
  0xc9   :  { %v1291_v36 = vld [vmem:[#allocation13] sm:$0xff] }
  0xca   :  { %1256 = vmatpush.bf16.msrb.mxu3 %v2009_v39 }
  0xcb   :  { %v889_v38 = vpop.f32.mrf.mxu3 }
  0xcc   :  { %v890_v43 = vadd.f32 %v889_v38, %v877_v42  ;;  %v2000_v42 = vld [vmem:[#allocation8 + $0x80] sm:$0xf] }
  0xce   :  { %v878_v40 = vpop.f32.mrf.mxu2 }
  0xcf   :  { %v2010_v40 = vld [vmem:[#allocation8 + $0x98] sm:$0xf0] }
  0xd3   :  { %v891_v27 = vpop.f32.mrf.mxu3 }
  0xd4   :  { %v2013_v27 = vor.u32 %v2276_v37, %v2010_v40  ;;  %v2074_v40 = vxor.u32 2147483648, %v1291_v36 }
  0xd6   :  { %1282 = vmatpush.bf16.msra.mxu1 %v2013_v27  ;;  %vm1295_vm6 = vcmp.lt.s32.totalorder %v2074_v40, 0 }
  0xd7   :  { %vm2140_vm7 = vmpackc.low %vm1295_vm6, %vm1295_vm6 }
  0xde   :  { %v902_v44 = vpop.f32.mrf.mxu0 }
  0xdf   :  { %v915_v45 = vpop.f32.mrf.mxu1  ;;  %v903_v49 = vadd.f32 %v902_v44, %v890_v43  ;;  %v2275_v43 = vld [vmem:[#allocation8 + $0x84] sm:$0xf0]  ;;  %v2274_v44 = vld [vmem:[#allocation8 + $0x84] sm:$0xf] }
  0xe0   :  { %v2005_v47 = vor.u32 %v2274_v44, %v2002_v46 }
  0xe1   :  { %v916_v55 = vadd.f32 %v915_v45, %v903_v49  ;;  %v2001_v45 = vor.u32 %v2275_v43, %v2000_v42 }
  0xe2   :  { %1283 = vmatpush.bf16.msra.mxu1 %v2005_v47 }
  0xe3   :  { %1257 = vmatpush.bf16.msrb.mxu3 %v2001_v45 }
  0xe6   :  { %v928_v0 = vpop.f32.mrf.mxu2  ;;  %v904_v32 = vpop.f32.mrf.mxu0 }
  0xe7   :  { %v929_v29 = vadd.f32 %v928_v0, %v916_v55  ;;  %v917_v6 = vpop.f32.mrf.mxu1  ;;  %1450 = vmatpush.bf16.msra.mxu3 %v2305_v7 }
  0xe9   :  { %v1023_v10 = vmax.f32 %v929_v29, 0.0 }
  0xeb   :  { %v1033_v11 = vmul.f32 2.0, %v1023_v10  ;;  %v941_v20 = vpop.f32.mrf.mxu3  ;;  %v2296_v10 = vld [vmem:[#allocation10 + $0x30] sm:$0xff]  ;;  %1451 = vmatpush.bf16.msra.mxu3 %v2304_v9 }
  0xec   :  { %v942_v52 = vadd.f32 %v941_v20, %v253_v48  ;;  %1438 = vmatpush.bf16.msra.mxu2 %v2296_v10 }
  0xed   :  { %v2063_v19 = vpack.c.bf16 %v1033_v11, %v1033_v11  ;;  %v2303_v11 = vld [vmem:[#allocation10 + $0x68] sm:$0xff] }
  0xee   :  { %v930_v2 = vpop.f32.mrf.mxu2 }
  0xef   :  { %2064 = vmatmul.msk.bf16.vlgmr.msrb.gmra.mxu2 %vm2062_vm1, %v2063_v19  ;;  %2070 = vmatmul.msk.bf16.vlgmr.msra.gmra.mxu0 %vm2062_vm1, %v2063_v19  ;;  %v2298_v2 = vld [vmem:[#allocation10 + $0x40] sm:$0xff] }
  0xf0   :  { %1452 = vmatpush.bf16.msra.mxu3 %v2303_v11  ;;  %1439 = vmatpush.bf16.msra.mxu2 %v2295_v12 }
  0xf3   :  { %v943_v54 = vpop.f32.mrf.mxu3 }
  0xf4   :  { %1453 = vmatpush.bf16.msra.mxu3 %v2302_v14  ;;  %1440 = vmatpush.bf16.msra.mxu2 %v2294_v15  ;;  %v1071_v54 = vld [vmem:[%s2666_s4] sm:$0x3] }
  0xf5   :  { %v1074_v28 = vperm.slane %v1071_v54, 1  ;;  %v1073_v34 = vperm.slane %v1071_v54, 0 }
  0xf8   :  { %1454 = vmatpush.bf16.msra.mxu3 %v2301_v16  ;;  %1441 = vmatpush.bf16.msra.mxu2 %v2293_v22 }
  0xfc   :  { %1455 = vmatpush.bf16.msra.mxu3 %v2300_v18  ;;  %1442 = vmatpush.bf16.msra.mxu2 %v2292_v24 }
  0xfe   :  { %v954_v38 = vpop.f32.mrf.mxu0 }
  0xff   :  { %v967_v41 = vpop.f32.mrf.mxu1  ;;  %v955_v55 = vadd.f32 %v954_v38, %v942_v52 }
 0x100   :  { %1456 = vmatpush.bf16.msra.mxu3 %v2299_v23  ;;  %1443 = vmatpush.bf16.msra.mxu2 %v2291_v1 }
 0x101   :  { %v968_v57 = vadd.f32 %v967_v41, %v955_v55 }
 0x104   :  { %1457 = vmatpush.bf16.msra.mxu3 %v2298_v2  ;;  %1444 = vmatpush.bf16.msra.mxu2 %v2290_v25 }
 0x106   :  { %v956_v49 = vpop.f32.mrf.mxu0  ;;  %v980_v50 = vpop.f32.mrf.mxu2 }
 0x107   :  { %v969_v51 = vpop.f32.mrf.mxu1  ;;  %v981_v59 = vadd.f32 %v980_v50, %v968_v57  ;;  %v2318_v49 = vld [vmem:[%s2668_s6] ss:$0 sm:$0xff] }
 0x10b   :  { %v993_v53 = vpop.f32.mrf.mxu3 }
 0x10c   :  { %v994_v61 = vadd.f32 %v993_v53, %v981_v59 }
 0x10e   :  { %v982_v56 = vpop.f32.mrf.mxu2 }
 0x113   :  { %v995_v58 = vpop.f32.mrf.mxu3 }
 0x11e   :  { %v1006_v62 = vpop.f32.mrf.mxu0 }
 0x11f   :  { %v1007_v63 = vadd.f32 %v1006_v62, %v994_v61  ;;  %v1019_v0 = vpop.f32.mrf.mxu1 }
 0x121   :  { %v1020_v4 = vadd.f32 %v1019_v0, %v1007_v63 }
 0x123   :  { %v1024_v5 = vmax.f32 %v1020_v4, 0.0 }
 0x125   :  { %v1034_v26 = vmul.f32 2.0, %v1024_v5 }
 0x126   :  { %v1008_v29 = vpop.f32.mrf.mxu0 }
 0x127   :  { %v2066_v32 = vpack.c.bf16 %v1034_v26, %v1034_v26  ;;  %v1021_v6 = vpop.f32.mrf.mxu1 }
 0x129   :  { %2067 = vmatmul.msk.bf16.vlgmr.msrb.gmra.mxu3 %vm2065_vm3, %v2066_v32  ;;  %2073 = vmatmul.msk.bf16.vlgmr.msra.gmra.mxu1 %vm2065_vm3, %v2066_v32 }
 0x16c   :  { %v1272_v17 = vpop.f32.mrf.mxu0 }
 0x16d   :  { %v1273_v30 = vadd.f32 %v1272_v17, %v1074_v28 }
 0x172   :  { %v1246_v19 = vpop.f32.mrf.mxu2 }
 0x173   :  { %v1247_v38 = vadd.f32 %v1246_v19, %v1073_v34 }
 0x174   :  { %v1274_v20 = vpop.f32.mrf.mxu0 }
 0x17a   :  { %v1248_v21 = vpop.f32.mrf.mxu2 }
 0x1a6   :  { %v1285_v33 = vpop.f32.mrf.mxu1 }
 0x1a7   :  { %v1286_v35 = vadd.f32 %v1285_v33, %v1273_v30 }
 0x1a9   :  { %v1290_v37 = vmax.f32 %v1286_v35, 0.0 }
 0x1ab   :  { %v1300_v39 = vmul.f32 2.0, %v1290_v37 }
 0x1ac   :  { %v1259_v41 = vpop.f32.mrf.mxu3 }
 0x1ad   :  { %v2144_v27 = vpack.c.bf16 %v1300_v39, %v1300_v39  ;;  %v1260_v42 = vadd.f32 %v1259_v41, %v1247_v38 }
 0x1ae   :  { %v1287_v43 = vpop.f32.mrf.mxu1 }
 0x1af   :  { %v1289_v44 = vmax.f32 %v1260_v42, 0.0  ;;  %2145 = vmatmul.msk.bf16.vlgmr.msra.gmra.mxu3 %vm2143_vm5, %v2144_v27 }
 0x1b1   :  { %v1299_v45 = vmul.f32 2.0, %v1289_v44 }
 0x1b3   :  { %v2141_v46 = vpack.c.bf16 %v1299_v45, %v1299_v45 }
 0x1b4   :  { %v1261_v47 = vpop.f32.mrf.mxu3 }
 0x1b5   :  { %2142 = vmatmul.msk.bf16.vlgmr.msra.gmra.mxu2 %vm2140_vm7, %v2141_v46 }
 0x232   :  { %v1459_v48 = vpop.f32.mrf.mxu3 }
 0x238   :  { %v1446_v50 = vpop.f32.mrf.mxu2 }
 0x239   :  { %v1447_v51 = vadd.f32 %v2318_v49, %v1446_v50 }
 0x23a   :  { %v1461_v52 = vpop.f32.mrf.mxu3 }
 0x23b   :  { %v1460_v53 = vadd.f32 %v1459_v48, %v1447_v51 }
 0x23d   :  { %1463 = vst [vmem:[#allocation14] sm:$0xff] %v1460_v53 }
 0x23e   :  { %1474 = dma.vmem_to_hbm [thread:$0]  %s1470_s1, 128, %s1472_s26, [#allocation4]  }
 0x240   :  { %v1448_v55 = vpop.f32.mrf.mxu2 }
 0x241   :  { %2519 = dma.done.wait [#allocation4], 128  }
 0x242   :  { %2520 = vsyncadd [#allocation4], 4294967168 }
 0x243   :  { %1479 = vsyncpa [#allocation3], 1 }
 0x244   :  { %1480 = vsyncpa [#allocation6], 1 }
 0x245   :  { %1481 = vsyncpa [#allocation9], 1 }
 0x246   :  { %1482 = vsyncpa [#allocation12], 1 }
 0x247   :  { %1483 = vsyncpa [#allocation4], 1 }

</bundles_post_ra>
